<compile_context>
chip_gen: v6e
topology: v6e:2x2x1
jax: 0.10.0
libtpu: 0.0.40
codegen_flags: <defaults>
</compile_context>

<pallas_src>
import jax
import jax.numpy as jnp
from jax.experimental import pallas as pl
from jax.experimental.pallas import tpu as pltpu


# ------------------------------- helpers ------------------------------------


def _round_up(x, m):
    return ((x + m - 1) // m) * m


def _round_down(x, m):
    return (x // m) * m


def _sublane_pack(dtype):
    """Rows per packed sublane group: 8 for f32, 16 for bf16, 32 for int8/fp8."""
    return max(8, 32 // jnp.dtype(dtype).itemsize)


def _vmem_limit_bytes():
    """Per-generation VMEM limit with headroom (v7x: 64 MiB phys, v5e/v6e: 128 MiB)."""
    try:
        phys = int(pltpu.get_tpu_info().vmem_capacity_bytes)
    except Exception:  # unknown / query unavailable -> assume the smallest (v7x)
        phys = 64 * 1024 * 1024
    return min((phys * 3) // 4, 96 * 1024 * 1024)


def _pick_tb(B, K, N, itemsize, pack, vmem_limit):
    """Largest batch tile whose double-buffered streams fit the VMEM budget."""
    budget = (vmem_limit * 3) // 4                      # headroom for Mosaic internals
    resident = 2 * K * N * itemsize + 2 * N * 4         # W (dbuf) + f32 bias row
    per_row = 2 * (K + N) * itemsize                    # x + out, double-buffered
    tb = (budget - resident) // max(per_row, 1)
    tb = min(tb, 4096)                                  # diminishing returns past this
    return max(pack, _round_down(tb, pack))


# ------------------------------- kernel -------------------------------------


def diag_gaussian_mean_kernel(x_ref, wt_ref, b_ref, mean_ref):
    """mean = x @ W_t + b  (MXU matmul, f32 accumulate, unpadded lane-masked store)."""
    acc = jnp.dot(x_ref[...].astype(wt_ref.dtype), wt_ref[...],
                  preferred_element_type=jnp.float32)
    mean_ref[...] = (acc + b_ref[...]).astype(mean_ref.dtype)


# ------------------------------ wrapper -------------------------------------


def prepare_diag_gaussian_params(weight, bias, *, compute_dtype=None):
    """One-time (init-time) param prep.

    weight: [num_outputs, num_inputs]  (PyTorch nn.Linear layout)
    bias:   [num_outputs]
    Returns (wt [num_inputs, num_outputs], b_f32 [1, num_outputs]).
    Pass compute_dtype=jnp.bfloat16 to run the MXU at native bf16 rate (keep x bf16
    too to actually halve the dominant DMA stream); accumulation stays f32.
    """
    wt = jnp.asarray(weight).T
    if compute_dtype is not None:
        wt = wt.astype(compute_dtype)
    b_f32 = jnp.asarray(bias, jnp.float32).reshape(1, -1)   # pre-cast once at init
    return wt, b_f32


@jax.jit
def diag_gaussian(x, wt, b_f32, logstd):
    """Returns (action_mean [B, N], action_scale [N] f32) of the FixedNormal.

    x:      [B, num_inputs]
    wt:     [num_inputs, num_outputs]   (pre-transposed weight)
    b_f32:  [1, num_outputs]            (f32 bias row)
    logstd: [num_outputs]               (AddBias parameter)
    """
    B, K = x.shape
    Kw, N = wt.shape
    assert K == Kw, (K, Kw)

    itemsize = jnp.dtype(wt.dtype).itemsize
    pack = _sublane_pack(wt.dtype)
    vmem_limit = _vmem_limit_bytes()
    TB = _pick_tb(B, K, N, itemsize, pack, vmem_limit)

    out_shape = jax.ShapeDtypeStruct((B, N), x.dtype)

    if B <= TB:
        # Single-block path: whole arrays live in VMEM, no grid / pipeline setup.
        # (At PPO-head sizes a standalone launch is overhead-bound anyway; see TODO.)
        action_mean = pl.pallas_call(
            diag_gaussian_mean_kernel,
            out_shape=out_shape,
            compiler_params=pltpu.CompilerParams(vmem_limit_bytes=vmem_limit),
        )(x, wt, b_f32)
    else:
        grid = (pl.cdiv(B, TB),)
        action_mean = pl.pallas_call(
            diag_gaussian_mean_kernel,
            out_shape=out_shape,
            grid=grid,
            in_specs=[
                pl.BlockSpec((TB, K), lambda i: (i, 0)),   # x: batch-tiled
                pl.BlockSpec((K, N), lambda i: (0, 0)),    # weight: resident
                pl.BlockSpec((1, N), lambda i: (0, 0)),    # f32 bias: resident
            ],
            out_specs=pl.BlockSpec((TB, N), lambda i: (i, 0)),  # unpadded output
            compiler_params=pltpu.CompilerParams(
                dimension_semantics=("parallel",),
                vmem_limit_bytes=vmem_limit,
            ),
        )(x, wt, b_f32)

    # scale = exp(logstd) is batch-independent: return the [N] f32 vector and let
    # the FixedNormal consumer broadcast it (no materialized [B, N] HBM slab).
    action_scale = jnp.exp(logstd.astype(jnp.float32))
    return action_mean, action_scale


# -------------------------------- test --------------------------------------


if __name__ == "__main__":
    key = jax.random.PRNGKey(0)
    k_x, k_w, k_x2 = jax.random.split(key, 3)

    batch = 8
    num_inputs = 32
    num_outputs = 8

    # Deterministic parameter init matching the module's __init__:
    #   fc_mean: orthogonal weight (gain=1), zero bias; logstd AddBias: zeros.
    weight = jax.nn.initializers.orthogonal(scale=1.0)(
        k_w, (num_outputs, num_inputs), jnp.float32
    )
    bias = jnp.zeros((num_outputs,), jnp.float32)
    logstd = jnp.zeros((num_outputs,), jnp.float32)

    # One-time parameter prep (would live at module-init time in a real model).
    wt, b_f32 = prepare_diag_gaussian_params(weight, bias)

    # --- small-batch (single-block) path ---
    x = jax.random.normal(k_x, (batch, num_inputs), jnp.float32)
    mean, scale = diag_gaussian(x, wt, b_f32, logstd)
    jax.block_until_ready((mean, scale))

    ref_mean = x @ weight.T + bias[None, :]
    ref_scale = jnp.exp(logstd)
    assert mean.shape == (batch, num_outputs)
    assert scale.shape == (num_outputs,)
    assert jnp.allclose(mean, ref_mean, atol=1e-5, rtol=1e-5)
    assert jnp.allclose(scale, ref_scale, atol=1e-6, rtol=1e-6)

    # --- large-batch (tiled, pipelined) path ---
    big_batch = 8192
    x_big = jax.random.normal(k_x2, (big_batch, num_inputs), jnp.float32)
    mean_big, scale_big = diag_gaussian(x_big, wt, b_f32, logstd)
    jax.block_until_ready((mean_big, scale_big))

    ref_big = x_big @ weight.T + bias[None, :]
    assert mean_big.shape == (big_batch, num_outputs)
    assert jnp.allclose(mean_big, ref_big, atol=1e-4, rtol=1e-4)
    assert jnp.allclose(scale_big, ref_scale, atol=1e-6, rtol=1e-6)

    print("KERNEL_OK")
</pallas_src>

<mosaic_0001>
module attributes {stable_mosaic.version = 11 : i64} {
  func.func @diag_gaussian_mean_kernel(%arg0: memref<8x32xf32, #tpu.memory_space<vmem>>, %arg1: memref<32x8xf32, #tpu.memory_space<vmem>>, %arg2: memref<1x8xf32, #tpu.memory_space<vmem>>, %arg3: memref<8x8xf32, #tpu.memory_space<vmem>>) attributes {dimension_semantics = [], scalar_prefetch = 0 : i64, scratch_operands = 0 : i64, tpu.core_type = #tpu.core_type<tc>} {
    %c0 = arith.constant 0 : index
    %c0_0 = arith.constant 0 : index
    %0 = vector.load %arg0[%c0, %c0_0] : memref<8x32xf32, #tpu.memory_space<vmem>>, vector<8x32xf32>
    %c0_1 = arith.constant 0 : index
    %c0_2 = arith.constant 0 : index
    %1 = vector.load %arg1[%c0_1, %c0_2] : memref<32x8xf32, #tpu.memory_space<vmem>>, vector<32x8xf32>
    %cst = arith.constant dense<0.000000e+00> : vector<8x8xf32>
    %2 = tpu.matmul %0, %1, %cst {dimension_numbers = #tpu.dot_dimension_numbers<[1], [0], [0], [1], [0, 0, 1, 1], [], []>} : vector<8x32xf32>, vector<32x8xf32>, vector<8x8xf32> -> vector<8x8xf32>
    %c0_3 = arith.constant 0 : index
    %c0_4 = arith.constant 0 : index
    %3 = vector.load %arg2[%c0_3, %c0_4] : memref<1x8xf32, #tpu.memory_space<vmem>>, vector<1x8xf32>
    %4 = vector.broadcast %3 : vector<1x8xf32> to vector<8x8xf32>
    %5 = arith.addf %2, %4 : vector<8x8xf32>
    %c0_5 = arith.constant 0 : index
    %c0_6 = arith.constant 0 : index
    %6 = vector.load %arg3[%c0_5, %c0_6] : memref<8x8xf32, #tpu.memory_space<vmem>>, vector<8x8xf32>
    tpu.vector_store %arg3[%c0_5, %c0_6], %5 {strides = array<i32>} : memref<8x8xf32, #tpu.memory_space<vmem>>, vector<8x8xf32>,
    return
  }
}

</mosaic_0001>

<bundles_post_ra>
// kernel: diag_gaussian.1
= control target key start
LH: loop header
LB: loop body
LE: loop exit
PB: predicated region body
PF: predicated region fallthrough
CT: control target
= control target key end

     0   :  { %v160_v1 = vmov 0.0   ;;  %vm161_vm0 = vmmov 0   ;;  %s204_s0 = inlined_call_operand.vmem [shape: f32[8,32], index: 0, kind: input, shape index: {}]   ;;  %s205_s1 = inlined_call_operand.vmem [shape: f32[32,8], index: 1, kind: input, shape index: {}]   ;;  %s206_s2 = inlined_call_operand.vmem [shape: f32[1,8], index: 2, kind: input, shape index: {}]   ;;  %s207_s3 = inlined_call_operand.hbm [shape: f32[8,8], index: 3, kind: output, shape index: {}]  }
   0x1   :  { %v19_v0 = vld [vmem:[%s205_s1 + $0x18] sm:$0xff]  ;;  %124 = vmatprep.subr.mxu0 %v160_v1  ;;  %v18_v2 = vld [vmem:[%s205_s1 + $0x10] sm:$0xff]  ;;  %132 = vmatprep.mubr.msk.f32.mxu0 %vm161_vm0, %v160_v1 }
   0x2   :  { %125 = vmatpush3.msra.mxu0 %v19_v0 }
   0x3   :  { %8 = vsyncpa [#allocation3], 0  ;;  %126 = vmatprep.subr.mxu0 %v160_v1  ;;  %v17_v3 = vld [vmem:[%s205_s1 + $0x8] sm:$0xff]  ;;  %v16_v4 = vld [vmem:[%s205_s1] sm:$0xff]  ;;  %vm27_vm1 = vcmask 261120   ;;  %s162_s24 = smov [#allocation2]  }
   0x4   :  { %127 = vmatpush3.msra.mxu0 %v18_v2  ;;  %v15_v5 = vld [vmem:[%s204_s0] sm:$0xff]  ;;  %s109_s25 = sshll.u32 %s162_s24, 4  ;;  %vm101_vm2 = vcmask 64512   ;;  %s110_s25 = int_to_ptr.vmem [resolvable:$true] %s109_s25 }
   0x5   :  { %128 = vmatprep.subr.mxu0 %v160_v1  ;;  %v117_v6 = vld [vmem:[%s206_s2] ss:$0 sm:$0xff]  ;;  %s138_s1 = scalar_lea.vmem %s110_s25, 128  ;;  %p143_p1 = scmp.lt.s32.totalorder %s110_s25, %s110_s25 }
   0x6   :  { %129 = vmatpush3.msra.mxu0 %v17_v3  ;;  %p139_p0 = scmp.ne.s32.totalorder %s110_s25, %s138_s1  ;;  %p144_p2 = scmp.lt.s32.totalorder %s138_s1, %s138_s1 }
   0x7   :  { %130 = vmatprep.subr.mxu0 %v160_v1 }
   0x8   :  { %131 = vmatpush3.msra.mxu0 %v16_v4  ;;  %p145_p3 = por %p144_p2, %p143_p1 }
   0x9   :  { %133 = vmatmul.mubr.msk.f32.vlgmr.msra.gmra.mxu0 %vm27_vm1, %v15_v5 }
   0xa   :  { %p146_p4 = pnand %p145_p3, %p139_p0 }
  0xc9   :  { %v97_v7 = vpop.f32.mrf.mxu0 }
  0xca   :  { %v98_v8 = vadd.f32 %v117_v6, %v97_v7 }
  0xcb   :  { %v134_v9 = vpop.f32.mrf.mxu0 }
  0xcc   :  { %102 = vst.msk [vmem:[#allocation2] sm:$0xff] %vm101_vm2, %v98_v8 }
  0xcd   :  { %149 = shalt.err (!%p146_p4)
}
  0xce   :  { %112 = dma.vmem_to_hbm [thread:$0]  %s110_s25, 128, %s207_s3, [#allocation3]  }
  0xcf   :  { %158 = dma.done.wait [#allocation3], 128  }
  0xd0   :  { %159 = vsyncadd [#allocation3], 4294967168 }
  0xd1   :  { %116 = vsyncpa [#allocation3], 1 }

</bundles_post_ra>
